<compile_context>
chip_gen: v7x
topology: tpu7x:2x2x1
jax: 0.10.0
libtpu: 0.0.40
codegen_flags: <defaults>
</compile_context>

<pallas_src>
import functools

import jax
import jax.numpy as jnp
from jax.experimental import pallas as pl
from jax.experimental.pallas import tpu as pltpu

_LANES = 128
_SUBLANES = 8
_VMEM_BUDGET = 12 * 1024 * 1024     # stay under v5e's 16 MiB default scoped VMEM
_MEGACORE_BYTES = 2 * 1024 * 1024   # above this, force >= 2 grid steps (v7x)


def _round_up(x, m):
    return -(-x // m) * m


def _round_down(x, m):
    return (x // m) * m


# ----------------------------- kernels ------------------------------------


def _reduce_kernel(*refs, inv_k):
    """refs = (x_0, ..., x_{K-1}, out); every block is (tm, 128)."""
    x_refs, o_ref = refs[:-1], refs[-1]
    acc_dt = jnp.float32 if jnp.issubdtype(o_ref.dtype, jnp.floating) else jnp.int32
    acc = x_refs[0][...].astype(acc_dt)
    for r in x_refs[1:]:
        acc = acc + r[...].astype(acc_dt)
    if inv_k is not None:                       # mean
        acc = acc.astype(jnp.float32) * inv_k
    o_ref[...] = acc.astype(o_ref.dtype)


def _concat_kernel(*refs, offsets, sizes):
    """refs = (x_0, ..., x_{K-1}, out).

    x_i block: (tn, sizes[i]); out block: (tn, sum(sizes)).  Candidate i is
    written at a static, 128-aligned lane offset -> full (unmasked) stores.
    """
    x_refs, o_ref = refs[:-1], refs[-1]
    for r, off, sz in zip(x_refs, offsets, sizes):
        o_ref[:, off:off + sz] = r[...]


# -------------------------- tile-size selection -----------------------------


def _choose_row_tile(n_rows, itemsize, n_inputs):
    """Row tile for (n_rows, 128) slabs (sum/mean path)."""
    # Per-buffer cap so that 2 * (K inputs + 1 output) double-buffered tiles
    # stay under the scoped-VMEM budget; 2-4 MiB per buffer is the sweet spot.
    per_buf = min(4 << 20, max(64 << 10, _VMEM_BUDGET // (2 * (n_inputs + 1))))
    max_rows = max(_SUBLANES, _round_down(per_buf // (_LANES * itemsize), 32))
    slab_bytes = n_rows * _LANES * itemsize
    min_steps = 2 if slab_bytes > _MEGACORE_BYTES else 1   # v7x megacore split
    steps = max(min_steps, -(-n_rows // max_rows))
    if steps == 1:
        return n_rows                      # full-dim block (always legal)
    row_mult = 8 if itemsize >= 4 else (16 if itemsize == 2 else 32)
    tm = _round_up(-(-n_rows // steps), row_mult)
    return max(row_mult, min(tm, max_rows))


def _choose_batch_tile(n_rows, row_width, itemsize):
    """Batch-row tile for the concat kernel; None => too wide, use fallback."""
    per_row = 4 * row_width * itemsize          # (in + out) * double-buffering
    if per_row * min(n_rows, _SUBLANES) > _VMEM_BUDGET:
        return None
    if n_rows <= _SUBLANES:
        return n_rows                           # full-dim block
    max_tn = max(_SUBLANES, _round_down(_VMEM_BUDGET // per_row, _SUBLANES))
    min_steps = 2 if n_rows * row_width * itemsize > _MEGACORE_BYTES else 1
    steps = max(min_steps, -(-n_rows // max_tn))
    tn = min(_round_up(-(-n_rows // steps), _SUBLANES), max_tn)
    return tn if tn < n_rows else n_rows


# ----------------------------- pallas wrappers ------------------------------


def _pallas_sum_mean(flats, mean):
    """flats: list of K identically-shaped (M, 128) arrays. Returns (M, 128)."""
    K = len(flats)
    M, L = flats[0].shape
    dtype = flats[0].dtype
    itemsize = dtype.itemsize
    tm = _choose_row_tile(M, itemsize, K)
    grid = (pl.cdiv(M, tm),)

    inv_k = (1.0 / K) if mean else None
    kernel = functools.partial(_reduce_kernel, inv_k=inv_k)
    flops = (K - 1 + (1 if mean else 0)) * M * L
    bytes_accessed = (K + 1) * M * L * itemsize

    return pl.pallas_call(
        kernel,
        out_shape=jax.ShapeDtypeStruct((M, L), dtype),
        grid_spec=pltpu.PrefetchScalarGridSpec(
            num_scalar_prefetch=0,
            grid=grid,
            in_specs=[pl.BlockSpec((tm, L), lambda i: (i, 0)) for _ in range(K)],
            out_specs=pl.BlockSpec((tm, L), lambda i: (i, 0)),
        ),
        compiler_params=pltpu.CompilerParams(
            dimension_semantics=("parallel",)),
        cost_estimate=pl.CostEstimate(flops=int(flops), transcendentals=0,
                                      bytes_accessed=int(bytes_accessed)),
    )(*flats)


def _pallas_concat(flats, tn):
    """flats: list of K (N, chw_i) arrays (chw_i may differ). Returns (N, sum chw_i)."""
    N = flats[0].shape[0]
    dtype = flats[0].dtype
    itemsize = dtype.itemsize
    sizes = tuple(int(f.shape[1]) for f in flats)
    offsets, total = [], 0
    for s in sizes:
        offsets.append(total)
        total += s
    offsets = tuple(offsets)

    grid = (pl.cdiv(N, tn),)
    kernel = functools.partial(_concat_kernel, offsets=offsets, sizes=sizes)
    in_specs = [pl.BlockSpec((tn, s), lambda b: (b, 0)) for s in sizes]
    bytes_accessed = 2 * N * total * itemsize

    return pl.pallas_call(
        kernel,
        out_shape=jax.ShapeDtypeStruct((N, total), dtype),
        grid_spec=pltpu.PrefetchScalarGridSpec(
            num_scalar_prefetch=0,
            grid=grid,
            in_specs=in_specs,
            out_specs=pl.BlockSpec((tn, total), lambda b: (b, 0)),
        ),
        compiler_params=pltpu.CompilerParams(
            dimension_semantics=("parallel",)),
        cost_estimate=pl.CostEstimate(flops=0, transcendentals=0,
                                      bytes_accessed=int(bytes_accessed)),
    )(*flats)


# ------------------------------ forward pass --------------------------------


def _sum_mean(selected, mean):
    shapes = {t.shape for t in selected}
    dtypes = {t.dtype for t in selected}
    if len(shapes) != 1 or len(dtypes) != 1:
        # Mismatched candidates (broadcasting / promotion): plain jnp fallback.
        out = selected[0]
        for t in selected[1:]:
            out = out + t
        return out / len(selected) if mean else out

    shape = selected[0].shape
    total = int(selected[0].size)
    pad = (-total) % _LANES
    if pad == 0:
        # Common case: metadata-only reshape to lane-dense (M, 128); no copies.
        flats = [t.reshape(-1, _LANES) for t in selected]
        out2d = _pallas_sum_mean(flats, mean)
        return out2d.reshape(shape)

    # Ragged tail (< 128 elements): pad to the next lane multiple, then trim.
    # TODO(synk): a masked in-kernel tail would avoid this extra pad/trim copy.
    flats = [jnp.pad(t.reshape(-1), (0, pad)).reshape(-1, _LANES) for t in selected]
    out2d = _pallas_sum_mean(flats, mean)
    return out2d.reshape(-1)[:total].reshape(shape)


def _concat_dim1(selected):
    first = selected[0]
    ndim = first.ndim
    ok = (ndim >= 2
          and all(t.dtype == first.dtype for t in selected)
          and all(t.ndim == ndim for t in selected)
          and all(t.shape[0] == first.shape[0] for t in selected)
          and all(t.shape[2:] == first.shape[2:] for t in selected))
    if ok:
        N = first.shape[0]
        sizes = [int(t.size) // N for t in selected]     # flattened width per row
        if all(s % _LANES == 0 for s in sizes):
            tn = _choose_batch_tile(N, sum(sizes), first.dtype.itemsize)
            if tn is not None:
                flats = [t.reshape(N, -1) for t in selected]       # metadata-only
                out2d = _pallas_concat(flats, tn)                  # (N, sum sizes)
                out_c = sum(t.shape[1] for t in selected)
                return out2d.reshape((N, out_c) + first.shape[2:])  # metadata-only
    # Fallback: non-128-aligned widths / rows too wide for VMEM / mixed dtypes.
    # This is a pure HBM copy that XLA already performs at roofline.
    return jnp.concatenate(selected, axis=1)


def chosen_inputs_forward(candidate_inputs, chosen, reduction):
    """JAX/Pallas equivalent of nni ChosenInputs.forward."""
    selected = [candidate_inputs[i] for i in chosen]

    if reduction == 'none':
        return selected          # list passthrough; nothing to kernelize
    if not selected:
        return None
    if len(selected) == 1:
        return selected[0]
    if reduction in ('sum', 'mean'):
        return _sum_mean(selected, mean=(reduction == 'mean'))
    if reduction == 'concat':
        return _concat_dim1(selected)
    raise ValueError('Unrecognized reduction policy: "{}"'.format(reduction))


# --------------------------------- tests -------------------------------------


if __name__ == "__main__":
    key = jax.random.PRNGKey(0)
    n_candidates = 3
    N, C, H, W = 2, 4, 16, 16
    keys = jax.random.split(key, n_candidates)
    candidate_inputs = [
        jax.random.normal(k, (N, C, H, W), dtype=jnp.float32) for k in keys
    ]
    chosen = [0, 2]

    # sum (128-aligned -> zero-copy lane-dense path)
    out_sum = jax.block_until_ready(
        chosen_inputs_forward(candidate_inputs, chosen, 'sum'))
    ref_sum = candidate_inputs[0] + candidate_inputs[2]
    assert out_sum.shape == (N, C, H, W)
    assert jnp.allclose(out_sum, ref_sum, atol=1e-6)

    # mean
    out_mean = jax.block_until_ready(
        chosen_inputs_forward(candidate_inputs, chosen, 'mean'))
    ref_mean = (candidate_inputs[0] + candidate_inputs[2]) / 2.0
    assert jnp.allclose(out_mean, ref_mean, atol=1e-6)

    # concat (dim=1, channels; CHW=1024 is 128-aligned -> Pallas path)
    out_cat = jax.block_until_ready(
        chosen_inputs_forward(candidate_inputs, chosen, 'concat'))
    ref_cat = jnp.concatenate([candidate_inputs[0], candidate_inputs[2]], axis=1)
    assert out_cat.shape == (N, 2 * C, H, W)
    assert jnp.allclose(out_cat, ref_cat, atol=1e-6)

    # concat with differing channel counts (still Pallas; 128-aligned widths)
    mixed = [jax.random.normal(keys[0], (N, 4, H, W), dtype=jnp.float32),
             jax.random.normal(keys[1], (N, 8, H, W), dtype=jnp.float32),
             jax.random.normal(keys[2], (N, 4, H, W), dtype=jnp.float32)]
    out_mix = jax.block_until_ready(chosen_inputs_forward(mixed, [0, 1], 'concat'))
    ref_mix = jnp.concatenate([mixed[0], mixed[1]], axis=1)
    assert out_mix.shape == (N, 12, H, W)
    assert jnp.allclose(out_mix, ref_mix, atol=1e-6)

    # mean on a non-128-aligned element count (pad-to-128 ragged-tail path)
    odd = [jax.random.normal(k, (2, 3, 5, 7), dtype=jnp.float32) for k in keys]
    out_odd = jax.block_until_ready(chosen_inputs_forward(odd, chosen, 'mean'))
    ref_odd = (odd[0] + odd[2]) / 2.0
    assert jnp.allclose(out_odd, ref_odd, atol=1e-6)

    # concat on odd shapes -> jnp.concatenate fallback
    out_odd_cat = jax.block_until_ready(
        chosen_inputs_forward(odd, chosen, 'concat'))
    ref_odd_cat = jnp.concatenate([odd[0], odd[2]], axis=1)
    assert jnp.allclose(out_odd_cat, ref_odd_cat)

    # sum exercising a multi-step, ragged row grid (M = 5187 rows of 128 lanes)
    med = [jax.random.normal(k, (5187, 8, 16), dtype=jnp.float32) for k in keys]
    out_med = jax.block_until_ready(chosen_inputs_forward(med, chosen, 'sum'))
    ref_med = med[0] + med[2]
    assert jnp.allclose(out_med, ref_med, atol=1e-5)

    # concat exercising a multi-step batch-row grid (N=32, CHW=16384)
    medc = [jax.random.normal(k, (32, 64, 16, 16), dtype=jnp.float32) for k in keys]
    out_medc = jax.block_until_ready(chosen_inputs_forward(medc, chosen, 'concat'))
    ref_medc = jnp.concatenate([medc[0], medc[2]], axis=1)
    assert out_medc.shape == (32, 128, 16, 16)
    assert jnp.allclose(out_medc, ref_medc)

    # bf16 sum (byte-aware tile sizing path)
    bf = [t.astype(jnp.bfloat16) for t in candidate_inputs]
    out_bf = jax.block_until_ready(chosen_inputs_forward(bf, chosen, 'sum'))
    ref_bf = (bf[0].astype(jnp.float32) + bf[2].astype(jnp.float32)).astype(jnp.bfloat16)
    assert jnp.allclose(out_bf.astype(jnp.float32), ref_bf.astype(jnp.float32), atol=1e-2)

    # 'none' and single-choice paths (no kernel needed)
    out_none = chosen_inputs_forward(candidate_inputs, chosen, 'none')
    assert isinstance(out_none, list) and len(out_none) == 2
    out_single = chosen_inputs_forward(candidate_inputs, [1], 'sum')
    assert jnp.allclose(out_single, candidate_inputs[1])

    print("KERNEL_OK")
</pallas_src>

<mosaic_0001>
module attributes {stable_mosaic.version = 11 : i64} {
  func.func @_reduce_kernel(%arg0: i32, %arg1: memref<16x128xf32, #tpu.memory_space<vmem>>, %arg2: memref<16x128xf32, #tpu.memory_space<vmem>>, %arg3: memref<16x128xf32, #tpu.memory_space<vmem>>) attributes {dimension_semantics = [#tpu.dimension_semantics<parallel>], iteration_bounds = array<i64: 1>, scalar_prefetch = 0 : i64, scratch_operands = 0 : i64, tpu.core_type = #tpu.core_type<tc>, window_params = [{transform_indices = @transform_0, window_bounds = array<i64: 16, 128>}, {transform_indices = @transform_1, window_bounds = array<i64: 16, 128>}, {transform_indices = @transform_2, window_bounds = array<i64: 16, 128>}]} {
    %c0 = arith.constant 0 : index
    %c0_0 = arith.constant 0 : index
    %0 = vector.load %arg1[%c0, %c0_0] : memref<16x128xf32, #tpu.memory_space<vmem>>, vector<16x128xf32>
    %c0_1 = arith.constant 0 : index
    %c0_2 = arith.constant 0 : index
    %1 = vector.load %arg2[%c0_1, %c0_2] : memref<16x128xf32, #tpu.memory_space<vmem>>, vector<16x128xf32>
    %2 = arith.addf %0, %1 : vector<16x128xf32>
    %c0_3 = arith.constant 0 : index
    %c0_4 = arith.constant 0 : index
    %3 = vector.load %arg3[%c0_3, %c0_4] : memref<16x128xf32, #tpu.memory_space<vmem>>, vector<16x128xf32>
    tpu.vector_store %arg3[%c0_3, %c0_4], %2 {strides = array<i32>} : memref<16x128xf32, #tpu.memory_space<vmem>>, vector<16x128xf32>,
    return
  }
  func.func @transform_0(%arg0: i32) -> (i32, i32) {
    %c0_i32 = arith.constant 0 : i32
    %c0_i32_0 = arith.constant 0 : i32
    return %arg0, %c0_i32 : i32, i32
  }
  func.func @transform_1(%arg0: i32) -> (i32, i32) {
    %c0_i32 = arith.constant 0 : i32
    %c0_i32_0 = arith.constant 0 : i32
    return %arg0, %c0_i32 : i32, i32
  }
  func.func @transform_2(%arg0: i32) -> (i32, i32) {
    %c0_i32 = arith.constant 0 : i32
    %c0_i32_0 = arith.constant 0 : i32
    return %arg0, %c0_i32 : i32, i32
  }
}

</mosaic_0001>

<bundles_post_ra>
// kernel: tpu_custom_call.1
= control target key start
LH: loop header
LB: loop body
LE: loop exit
PB: predicated region body
PF: predicated region fallthrough
CT: control target
= control target key end

     0   :  { %7 = vsyncpa [#allocation3], 0  ;;  %s208_s0 = inlined_call_operand.hbm [shape: f32[16,128], index: 0, kind: input, shape index: {}]   ;;  %s209_s1 = inlined_call_operand.hbm [shape: f32[16,128], index: 1, kind: input, shape index: {}]   ;;  %s210_s2 = inlined_call_operand.hbm [shape: f32[16,128], index: 2, kind: output, shape index: {}]  }
   0x1   :  { %8 = vsyncpa [#allocation6], 0 }
   0x2   :  { %9 = vsyncpa [#allocation4], 0  ;;  %s143_s9 = smov [#allocation2]   ;;  %s71_s13 = scalar_lea.hbm %s208_s0, 256 }
   0x3   :  { %s15_s10 = sshll.u32 %s143_s9, 4  ;;  %p72_p0 = scmp.ne.s32.totalorder %s208_s0, %s71_s13  ;;  %s16_s10 = int_to_ptr.vmem [resolvable:$true] %s15_s10 }
   0x4   :  { %p75_p1 = scmp.lt.u32.totalorder %s71_s13, %s208_s0 }
   0x6   :  { %p77_p2 = pnand %p75_p1, %p72_p0 }
   0x8   :  { %80 = shalt.err (!%p77_p2)
}
   0x9   :  { %s81_s18 = scalar_lea.vmem %s16_s10, 256  ;;  %p86_p4 = scmp.lt.s32.totalorder %s16_s10, %s16_s10 }
   0xa   :  { %p82_p3 = scmp.ne.s32.totalorder %s16_s10, %s81_s18  ;;  %p87_p5 = scmp.lt.s32.totalorder %s81_s18, %s81_s18 }
   0xc   :  { %p88_p6 = por %p87_p5, %p86_p4 }
   0xe   :  { %p89_p7 = pnand %p88_p6, %p82_p3 }
  0x10   :  { %92 = shalt.err (!%p89_p7)
}
  0x11   :  { %s144_s19 = smov 128   ;;  %s145_s20 = smov 8  }
  0x12   :  { %21 = dma.hbm_to_vmem [thread:$0]  %s208_s0, 256, %s16_s10, [#allocation3], %s144_s19, %s144_s19, %s145_s20  }
  0x13   :  { %s146_s23 = smov [#allocation5]   ;;  %s93_s27 = scalar_lea.hbm %s209_s1, 256 }
  0x14   :  { %s27_s24 = sshll.u32 %s146_s23, 4  ;;  %p94_p8 = scmp.ne.s32.totalorder %s209_s1, %s93_s27  ;;  %s28_s24 = int_to_ptr.vmem [resolvable:$true] %s27_s24 }
  0x15   :  { %p97_p9 = scmp.lt.u32.totalorder %s93_s27, %s209_s1 }
  0x17   :  { %p99_p10 = pnand %p97_p9, %p94_p8 }
  0x19   :  { %102 = shalt.err (!%p99_p10)
}
  0x1a   :  { %s103_s4 = scalar_lea.vmem %s28_s24, 256  ;;  %p108_p12 = scmp.lt.s32.totalorder %s28_s24, %s28_s24 }
  0x1b   :  { %p104_p11 = scmp.ne.s32.totalorder %s28_s24, %s103_s4  ;;  %p109_p13 = scmp.lt.s32.totalorder %s103_s4, %s103_s4 }
  0x1d   :  { %p110_p0 = por %p109_p13, %p108_p12 }
  0x1f   :  { %p111_p1 = pnand %p110_p0, %p104_p11 }
  0x21   :  { %114 = shalt.err (!%p111_p1)
}
  0x22   :  { %33 = dma.hbm_to_vmem [thread:$0]  %s209_s1, 256, %s28_s24, [#allocation6], %s144_s19, %s144_s19, %s145_s20  }
  0x23   :  { %137 = dma.done.wait [#allocation3], 256  }
  0x24   :  { %138 = vsyncadd [#allocation3], 4294967040 }
  0x25   :  { %139 = dma.done.wait [#allocation6], 256  }
  0x26   :  { %140 = vsyncadd [#allocation6], 4294967040  ;;  %s147_s6 = smov [#allocation7]   ;;  %v40_v0 = vld [vmem:[#allocation2] sm:$0xff]  ;;  %v42_v1 = vld [vmem:[#allocation5] sm:$0xff] }
  0x27   :  { %s53_s7 = sshll.u32 %s147_s6, 4  ;;  %v41_v2 = vld [vmem:[#allocation2 + $0x8] sm:$0xff]  ;;  %v44_v3 = vadd.f32 %v42_v1, %v40_v0  ;;  %v43_v4 = vld [vmem:[#allocation5 + $0x8] sm:$0xff]  ;;  %s54_s7 = int_to_ptr.vmem [resolvable:$true] %s53_s7 }
  0x28   :  { %v45_v5 = vadd.f32 %v43_v4, %v41_v2  ;;  %s115_s8 = scalar_lea.vmem %s54_s7, 256  ;;  %p120_p3 = scmp.lt.s32.totalorder %s54_s7, %s54_s7 }
  0x29   :  { %46 = vst [vmem:[#allocation7] sm:$0xff] %v44_v3  ;;  %p116_p2 = scmp.ne.s32.totalorder %s54_s7, %s115_s8  ;;  %p121_p4 = scmp.lt.s32.totalorder %s115_s8, %s115_s8 }
  0x2a   :  { %47 = vst [vmem:[#allocation7 + $0x8] sm:$0xff] %v45_v5 }
  0x2b   :  { %p122_p5 = por %p121_p4, %p120_p3 }
  0x2d   :  { %p123_p6 = pnand %p122_p5, %p116_p2 }
  0x2f   :  { %126 = shalt.err (!%p123_p6)
}
  0x30   :  { %s127_s10 = scalar_lea.hbm %s210_s2, 256 }
  0x31   :  { %p128_p7 = scmp.ne.s32.totalorder %s210_s2, %s127_s10  ;;  %p131_p8 = scmp.lt.u32.totalorder %s127_s10, %s210_s2 }
  0x33   :  { %p133_p9 = pnand %p131_p8, %p128_p7 }
  0x35   :  { %136 = shalt.err (!%p133_p9)
}
  0x36   :  { %59 = dma.vmem_to_hbm [thread:$0]  %s54_s7, 256, %s210_s2, [#allocation4], %s144_s19, %s144_s19, %s145_s20  }
  0x37   :  { %141 = dma.done.wait [#allocation4], 256  }
  0x38   :  { %142 = vsyncadd [#allocation4], 4294967040 }
  0x39   :  { %63 = vsyncpa [#allocation3], 1 }
  0x3a   :  { %64 = vsyncpa [#allocation6], 1 }
  0x3b   :  { %65 = vsyncpa [#allocation4], 1 }

</bundles_post_ra>
